<compile_context>
chip_gen: v5e
topology: v5e:2x2
jax: 0.10.0
libtpu: 0.0.40
codegen_flags: <defaults>
</compile_context>

<pallas_src>
import functools

import jax
import jax.numpy as jnp
from jax.experimental import pallas as pl
from jax.experimental.pallas import tpu as pltpu


def _round_up(x: int, m: int) -> int:
    return ((x + m - 1) // m) * m


def _cdiv(a: int, b: int) -> int:
    return (a + b - 1) // b


def _device_kind() -> str:
    try:
        return jax.devices()[0].device_kind.lower()
    except Exception:  # pragma: no cover - defensive
        return ""


def _netend_kernel(x_ref, w_ref, b_ref, o_ref, *, apply_softmax: bool):
    # x_ref: (NB, C_in, T)   w_ref: (C_out, C_in)   b_ref: (C_out, 1)
    # o_ref: (NB, C_out, T)
    w = w_ref[...].astype(jnp.float32)                     # (C_out, C_in)
    b = b_ref[...].astype(jnp.float32)                     # (C_out, 1)
    nb = x_ref.shape[0]

    # Small static unroll over the images folded into this block (NB <= 16).
    for n in range(nb):
        x = x_ref[n].astype(jnp.float32)                   # (C_in, T)

        # 1x1 conv == tiny matmul (M=C_out, K=C_in=21, N=T in lanes).  lhs K is
        # in lanes and rhs K is in sublanes -> natural MXU mapping, no relayout.
        logits = jnp.dot(w, x, preferred_element_type=jnp.float32) + b

        if apply_softmax:
            # Softmax over channels == reduction over the C_out sublane rows.
            m = jnp.max(logits, axis=0, keepdims=True)     # (1, T)
            e = jnp.exp(logits - m)
            s = jnp.sum(e, axis=0, keepdims=True)          # (1, T)
            # EUP approximate reciprocal + one Newton step: keeps the divide
            # off the VPU slot while retaining ~full f32 accuracy.
            inv = pl.reciprocal(s, approx=True)
            inv = inv * (2.0 - s * inv)
            out = e * inv
        else:
            out = jax.nn.sigmoid(logits)                   # exp/recip on the EUP

        o_ref[n] = out.astype(o_ref.dtype)


def net_end_forward(x_nchw, weight, bias):
    """NetEnd forward: 1x1 conv (C_in -> C_out) + softmax/sigmoid over channels.

    x_nchw: (N, C_in, H, W); weight: (C_out, C_in, 1, 1) or (C_out, C_in);
    bias: (C_out,).  Returns (N, C_out, H, W), same dtype as x.
    """
    N, C_in, H, W = x_nchw.shape
    C_out = weight.shape[0]
    HW = H * W

    # Free NCHW -> (N, C_in, HW) view; H*W lands in the lane dimension.
    x = x_nchw.reshape(N, C_in, HW)
    w = weight.reshape(C_out, C_in).astype(x.dtype)        # (C_out, C_in)
    b = bias.reshape(C_out, 1).astype(jnp.float32)         # (C_out, 1)

    in_item = jnp.dtype(x.dtype).itemsize
    out_item = in_item
    # VMEM bytes per image-column (sublane-padded rows), per buffer.
    rows_bytes = _round_up(C_in, 8) * in_item + _round_up(C_out, 8) * out_item

    # Per-generation double-buffered VMEM budget for the (in + out) blocks.
    # v4/v5e/v6e have 128 MiB physical VMEM -> 48 MiB budget; anything else
    # (including v7x with only 64 MiB per TensorCore) gets a conservative
    # 28 MiB so we never OOM on a newer part.
    kind = _device_kind()
    if ("v4" in kind) or ("v5" in kind) or ("v6" in kind):
        budget = 48 << 20
    else:
        budget = 28 << 20
    vmem_limit = min(budget + (8 << 20), 56 << 20)

    # Fold the batch into each block when it is cheap: every grid step then
    # covers all N images at one spatial slab, amortizing the ~0.35us/step cost.
    min_tile = HW if HW < 128 else 128
    fold = (N <= 16) and (2 * N * rows_bytes * min_tile <= budget)
    nb = N if fold else 1

    # HW tile: biggest lane-dense tile fitting the double-buffered budget.
    if HW <= 128:
        tile = HW                       # block last dim == full array dim
    else:
        max_cols = max(128, (budget // (2 * nb * rows_bytes)) // 128 * 128)
        tile = min(max_cols, _round_up(HW, 128))
        # Megacore guard (v7x has 2 TensorCores): keep >= 2 parallel steps.
        total_steps = (1 if fold else N) * _cdiv(HW, tile)
        if total_steps < 2:
            tile = _round_up(_cdiv(HW, 2), 128)
    grid_hw = _cdiv(HW, tile)

    kernel = functools.partial(_netend_kernel, apply_softmax=(C_out > 1))

    if fold:
        grid = (grid_hw,)
        x_spec = pl.BlockSpec((N, C_in, tile), lambda j: (0, 0, j))
        w_spec = pl.BlockSpec((C_out, C_in), lambda j: (0, 0))
        b_spec = pl.BlockSpec((C_out, 1), lambda j: (0, 0))
        o_spec = pl.BlockSpec((N, C_out, tile), lambda j: (0, 0, j))
        dims = ("parallel",)
    else:
        grid = (N, grid_hw)
        x_spec = pl.BlockSpec((1, C_in, tile), lambda n, j: (n, 0, j))
        w_spec = pl.BlockSpec((C_out, C_in), lambda n, j: (0, 0))
        b_spec = pl.BlockSpec((C_out, 1), lambda n, j: (0, 0))
        o_spec = pl.BlockSpec((1, C_out, tile), lambda n, j: (n, 0, j))
        dims = ("parallel", "parallel")

    cost = pl.CostEstimate(
        flops=2 * N * HW * C_in * C_out,
        transcendentals=N * HW * C_out,
        bytes_accessed=N * HW * (C_in * in_item + C_out * out_item)
        + (C_out * C_in + C_out) * 4,
    )

    out = pl.pallas_call(
        kernel,
        out_shape=jax.ShapeDtypeStruct((N, C_out, HW), x.dtype),
        grid_spec=pltpu.PrefetchScalarGridSpec(
            num_scalar_prefetch=0,
            grid=grid,
            in_specs=[x_spec, w_spec, b_spec],
            out_specs=o_spec,
        ),
        compiler_params=pltpu.CompilerParams(
            dimension_semantics=dims,
            vmem_limit_bytes=vmem_limit,
        ),
        cost_estimate=cost,
    )(x, w, b)

    return out.reshape(N, C_out, H, W)


def _reference_forward(x_nchw, weight, bias):
    # Plain-JAX reference (NCHW throughout).
    N, C_in, H, W = x_nchw.shape
    C_out = weight.shape[0]
    w = weight.reshape(C_out, C_in)
    logits = jnp.einsum('ncl,oc->nol', x_nchw.reshape(N, C_in, H * W), w,
                        precision=jax.lax.Precision.HIGHEST)
    logits = logits + bias[None, :, None]
    if C_out > 1:
        out = jax.nn.softmax(logits, axis=1)
    else:
        out = jax.nn.sigmoid(logits)
    return out.reshape(N, C_out, H, W)


if __name__ == "__main__":
    N, C_in, H, W = 2, 21, 16, 16

    key = jax.random.PRNGKey(0)
    kx, kw, kb, kw1, kb1 = jax.random.split(key, 5)

    x = jax.random.normal(kx, (N, C_in, H, W), dtype=jnp.float32)

    # PyTorch Conv2d default init mimic (uniform, bound = 1/sqrt(fan_in)).
    bound = 1.0 / jnp.sqrt(jnp.float32(C_in))

    # --- num_classes > 1 : Softmax path -----------------------------------
    num_classes = 4
    weight = jax.random.uniform(kw, (num_classes, C_in, 1, 1),
                                minval=-bound, maxval=bound, dtype=jnp.float32)
    bias = jax.random.uniform(kb, (num_classes,),
                              minval=-bound, maxval=bound, dtype=jnp.float32)

    out = jax.block_until_ready(net_end_forward(x, weight, bias))
    ref = _reference_forward(x, weight, bias)
    assert out.shape == (N, num_classes, H, W)
    assert jnp.allclose(out, ref, atol=1e-5, rtol=1e-5), \
        float(jnp.max(jnp.abs(out - ref)))

    # --- num_classes == 1 : Sigmoid path -----------------------------------
    weight1 = jax.random.uniform(kw1, (1, C_in, 1, 1),
                                 minval=-bound, maxval=bound, dtype=jnp.float32)
    bias1 = jax.random.uniform(kb1, (1,),
                               minval=-bound, maxval=bound, dtype=jnp.float32)

    out1 = jax.block_until_ready(net_end_forward(x, weight1, bias1))
    ref1 = _reference_forward(x, weight1, bias1)
    assert out1.shape == (N, 1, H, W)
    assert jnp.allclose(out1, ref1, atol=1e-5, rtol=1e-5), \
        float(jnp.max(jnp.abs(out1 - ref1)))

    print("KERNEL_OK")
</pallas_src>

<mosaic_0001>
module attributes {stable_mosaic.version = 11 : i64} {
  func.func @_netend_kernel(%arg0: i32, %arg1: memref<2x21x128xf32, #tpu.memory_space<vmem>>, %arg2: memref<4x21xf32, #tpu.memory_space<vmem>>, %arg3: memref<4x1xf32, #tpu.memory_space<vmem>>, %arg4: memref<2x4x128xf32, #tpu.memory_space<vmem>>) attributes {dimension_semantics = [#tpu.dimension_semantics<parallel>], iteration_bounds = array<i64: 2>, scalar_prefetch = 0 : i64, scratch_operands = 0 : i64, tpu.core_type = #tpu.core_type<tc>, window_params = [{transform_indices = @transform_0, window_bounds = array<i64: 2, 21, 128>}, {pipeline_mode = #tpu.pipeline_mode<synchronous>, transform_indices = @transform_1, window_bounds = array<i64: 4, 21>}, {pipeline_mode = #tpu.pipeline_mode<synchronous>, transform_indices = @transform_2, window_bounds = array<i64: 4, 1>}, {transform_indices = @transform_3, window_bounds = array<i64: 2, 4, 128>}]} {
    %c0 = arith.constant 0 : index
    %c0_0 = arith.constant 0 : index
    %0 = vector.load %arg2[%c0, %c0_0] : memref<4x21xf32, #tpu.memory_space<vmem>>, vector<4x21xf32>
    %c0_1 = arith.constant 0 : index
    %c0_2 = arith.constant 0 : index
    %1 = vector.load %arg3[%c0_1, %c0_2] : memref<4x1xf32, #tpu.memory_space<vmem>>, vector<4x1xf32>
    %c0_3 = arith.constant 0 : index
    %c0_4 = arith.constant 0 : index
    %c0_5 = arith.constant 0 : index
    %2 = vector.load %arg1[%c0_3, %c0_4, %c0_5] : memref<2x21x128xf32, #tpu.memory_space<vmem>>, vector<1x21x128xf32>
    %3 = vector.shape_cast %2 : vector<1x21x128xf32> to vector<21x128xf32>
    %cst = arith.constant dense<0.000000e+00> : vector<4x128xf32>
    %4 = tpu.matmul %0, %3, %cst {dimension_numbers = #tpu.dot_dimension_numbers<[1], [0], [0], [1], [0, 0, 1, 1], [], []>} : vector<4x21xf32>, vector<21x128xf32>, vector<4x128xf32> -> vector<4x128xf32>
    %5 = vector.broadcast %1 : vector<4x1xf32> to vector<4x128xf32>
    %6 = arith.addf %4, %5 : vector<4x128xf32>
    %cst_6 = arith.constant dense<0xFF800000> : vector<128xf32>
    %7 = vector.multi_reduction <maximumf>, %6, %cst_6 [0] : vector<4x128xf32> to vector<128xf32>
    %8 = vector.shape_cast %7 : vector<128xf32> to vector<1x128xf32>
    %9 = vector.broadcast %8 : vector<1x128xf32> to vector<4x128xf32>
    %10 = arith.subf %6, %9 : vector<4x128xf32>
    %11 = math.exp %10 : vector<4x128xf32>
    %cst_7 = arith.constant dense<0.000000e+00> : vector<128xf32>
    %12 = vector.multi_reduction <add>, %11, %cst_7 [0] : vector<4x128xf32> to vector<128xf32>
    %13 = vector.shape_cast %12 : vector<128xf32> to vector<1x128xf32>
    %14 = tpu.reciprocal %13 {approx = true} : vector<1x128xf32> -> vector<1x128xf32>
    %15 = arith.mulf %13, %14 : vector<1x128xf32>
    %cst_8 = arith.constant 2.000000e+00 : f32
    %16 = vector.broadcast %cst_8 : f32 to vector<1x128xf32>
    %17 = arith.subf %16, %15 : vector<1x128xf32>
    %18 = arith.mulf %14, %17 : vector<1x128xf32>
    %19 = vector.broadcast %18 : vector<1x128xf32> to vector<4x128xf32>
    %20 = arith.mulf %11, %19 : vector<4x128xf32>
    %c0_9 = arith.constant 0 : index
    %c0_10 = arith.constant 0 : index
    %c0_11 = arith.constant 0 : index
    %21 = vector.load %arg4[%c0_9, %c0_10, %c0_11] : memref<2x4x128xf32, #tpu.memory_space<vmem>>, vector<1x4x128xf32>
    %22 = vector.shape_cast %21 : vector<1x4x128xf32> to vector<4x128xf32>
    %23 = vector.shape_cast %20 : vector<4x128xf32> to vector<1x4x128xf32>
    tpu.vector_store %arg4[%c0_9, %c0_10, %c0_11], %23 {strides = array<i32>} : memref<2x4x128xf32, #tpu.memory_space<vmem>>, vector<1x4x128xf32>,
    %c1 = arith.constant 1 : index
    %c0_12 = arith.constant 0 : index
    %c0_13 = arith.constant 0 : index
    %24 = vector.load %arg1[%c1, %c0_12, %c0_13] : memref<2x21x128xf32, #tpu.memory_space<vmem>>, vector<1x21x128xf32>
    %25 = vector.shape_cast %24 : vector<1x21x128xf32> to vector<21x128xf32>
    %cst_14 = arith.constant dense<0.000000e+00> : vector<4x128xf32>
    %26 = tpu.matmul %0, %25, %cst_14 {dimension_numbers = #tpu.dot_dimension_numbers<[1], [0], [0], [1], [0, 0, 1, 1], [], []>} : vector<4x21xf32>, vector<21x128xf32>, vector<4x128xf32> -> vector<4x128xf32>
    %27 = vector.broadcast %1 : vector<4x1xf32> to vector<4x128xf32>
    %28 = arith.addf %26, %27 : vector<4x128xf32>
    %cst_15 = arith.constant dense<0xFF800000> : vector<128xf32>
    %29 = vector.multi_reduction <maximumf>, %28, %cst_15 [0] : vector<4x128xf32> to vector<128xf32>
    %30 = vector.shape_cast %29 : vector<128xf32> to vector<1x128xf32>
    %31 = vector.broadcast %30 : vector<1x128xf32> to vector<4x128xf32>
    %32 = arith.subf %28, %31 : vector<4x128xf32>
    %33 = math.exp %32 : vector<4x128xf32>
    %cst_16 = arith.constant dense<0.000000e+00> : vector<128xf32>
    %34 = vector.multi_reduction <add>, %33, %cst_16 [0] : vector<4x128xf32> to vector<128xf32>
    %35 = vector.shape_cast %34 : vector<128xf32> to vector<1x128xf32>
    %36 = tpu.reciprocal %35 {approx = true} : vector<1x128xf32> -> vector<1x128xf32>
    %37 = arith.mulf %35, %36 : vector<1x128xf32>
    %cst_17 = arith.constant 2.000000e+00 : f32
    %38 = vector.broadcast %cst_17 : f32 to vector<1x128xf32>
    %39 = arith.subf %38, %37 : vector<1x128xf32>
    %40 = arith.mulf %36, %39 : vector<1x128xf32>
    %41 = vector.broadcast %40 : vector<1x128xf32> to vector<4x128xf32>
    %42 = arith.mulf %33, %41 : vector<4x128xf32>
    %c1_18 = arith.constant 1 : index
    %c0_19 = arith.constant 0 : index
    %c0_20 = arith.constant 0 : index
    %43 = vector.load %arg4[%c1_18, %c0_19, %c0_20] : memref<2x4x128xf32, #tpu.memory_space<vmem>>, vector<1x4x128xf32>
    %44 = vector.shape_cast %43 : vector<1x4x128xf32> to vector<4x128xf32>
    %45 = vector.shape_cast %42 : vector<4x128xf32> to vector<1x4x128xf32>
    tpu.vector_store %arg4[%c1_18, %c0_19, %c0_20], %45 {strides = array<i32>} : memref<2x4x128xf32, #tpu.memory_space<vmem>>, vector<1x4x128xf32>,
    return
  }
  func.func @transform_0(%arg0: i32) -> (i32, i32, i32) {
    %c0_i32 = arith.constant 0 : i32
    %c0_i32_0 = arith.constant 0 : i32
    %c0_i32_1 = arith.constant 0 : i32
    return %c0_i32, %c0_i32_0, %arg0 : i32, i32, i32
  }
  func.func @transform_1(%arg0: i32) -> (i32, i32) {
    %c0_i32 = arith.constant 0 : i32
    %c0_i32_0 = arith.constant 0 : i32
    %c0_i32_1 = arith.constant 0 : i32
    return %c0_i32, %c0_i32_0 : i32, i32
  }
  func.func @transform_2(%arg0: i32) -> (i32, i32) {
    %c0_i32 = arith.constant 0 : i32
    %c0_i32_0 = arith.constant 0 : i32
    %c0_i32_1 = arith.constant 0 : i32
    return %c0_i32, %c0_i32_0 : i32, i32
  }
  func.func @transform_3(%arg0: i32) -> (i32, i32, i32) {
    %c0_i32 = arith.constant 0 : i32
    %c0_i32_0 = arith.constant 0 : i32
    %c0_i32_1 = arith.constant 0 : i32
    return %c0_i32, %c0_i32_0, %arg0 : i32, i32, i32
  }
}

</mosaic_0001>

<bundles_post_ra>
// kernel: tpu_custom_call.1
= control target key start
LH: loop header
LB: loop body
LE: loop exit
PB: predicated region body
PF: predicated region fallthrough
CT: control target
= control target key end

     0   :  { %8 = vsyncpa [#allocation4], 0  ;;  %s688_s0 = inlined_call_operand.vmem [shape: f32[2,21,256], index: 0, kind: input, shape index: {}]   ;;  %s689_s1 = inlined_call_operand.vmem [shape: f32[4,21], index: 1, kind: input, shape index: {}]   ;;  %s690_s2 = inlined_call_operand.vmem [shape: f32[4,1], index: 2, kind: input, shape index: {}]   ;;  %s691_s3 = inlined_call_operand.hbm [shape: f32[2,4,256], index: 3, kind: output, shape index: {}]  }
   0x1   :  { %10 = vsyncpa [#allocation4 + $0x1], 0  ;;  %s580_s12 = smov 0   ;;  %s582_s13 = smov 0  }
   0x2   :  { %s584_s14 = smov 0   ;;  %s586_s15 = smov 0  }
   0x3 LB: > { %s419_s16 = sadd.s32 4294967295, %s554_s15   ;;  %s420_s17 = sadd.s32 4294967294, %s554_s15   ;;  %s554_s15 = sphi %s586_s15, %s697_s15   ;;  %s550_s14 = sphi %s584_s14, %s696_s14   ;;  %s546_s13 = sphi %s582_s13, %s695_s13   ;;  %s542_s12 = sphi %s580_s12, %s694_s12  }
   0x4   : > { %s603_s18 = sadd.s32 1, %s554_s15   ;;  %s23_s19 = sadd.s32 1, %s550_s14 }
   0x5   : > { %s20_s20 = ssub.s32 %s554_s15, %s603_s18  ;;  %p30_p0 = scmp.ne.s32.totalorder %s550_s14, %s546_s13 }
   0x6   : > { %p21_p1 = scmp.eq.s32.totalorder %s20_s20, 0  ;;  %p31_p2 = scmp.eq.s32.totalorder %s554_s15, 0 }
   0x7   : > { %p102_p3 = scmp.eq.s32.totalorder %s419_s16, 1  ;;  %p107_p4 = scmp.ne.s32.totalorder %s546_s13, %s542_s12 }
   0x8   : > { %s616_s21 = scalar_select %p21_p1, %s550_s14, %s23_s19  }
   0x9   : > { %p32_p5 = por %p31_p2, %p30_p0  ;;  %p618_p6 = por %p102_p3, %p30_p0 }
   0xa   : > { %p108_p7 = scmp.eq.s32.totalorder %s420_s17, 1  ;;  %p422_p9 = scmp.ge.s32.totalorder %s554_s15, 2 }
   0xc   : > { %p622_p8 = por %p108_p7, %p107_p4  ;;  %130 = sbr.rel (%p422_p9) target bundleno = 27 (0x1b), region = 24 }
  0x11   : > { %133 = sbr.rel (!%p32_p5) target bundleno = 27 (0x1b), region = 28  ;;  %s135_s24 = sand.u32 (%p32_p5), 1, %s550_s14  }
  0x12   : > { %s423_s25 = sshll.u32 (%p32_p5), %s554_s15, 3  ;;  %s438_s26 = smul.u32 (%p32_p5), 48, %s135_s24 }
  0x13   : > { %s139_s29 = scalar_lea.vmem (%p32_p5), %s688_s0, %s423_s25 }
  0x14   : > { %v178_v0 = vld [vmem:[%s139_s29] sm:$0xff] (%p32_p5)  ;;  %v180_v1 = vld [vmem:[%s139_s29 + $0x10] sm:$0xff] (%p32_p5)  ;;  %s137_s30 = scalar_lea.vmem (%p32_p5), [#allocation2], %s438_s26 }
  0x15   : > { %v182_v2 = vld [vmem:[%s139_s29 + $0x20] sm:$0xff] (%p32_p5)  ;;  %179 = vst [vmem:[%s137_s30] sm:$0xff] (%p32_p5), %v178_v0  ;;  %v184_v3 = vld [vmem:[%s139_s29 + $0x30] sm:$0xff] (%p32_p5) }
  0x16   : > { %181 = vst [vmem:[%s137_s30 + $0x8] sm:$0xff] %v180_v1  ;;  %v186_v4 = vld [vmem:[%s139_s29 + $0x40] sm:$0xff]  ;;  %v188_v5 = vld [vmem:[%s139_s29 + $0x50] sm:$0xff] }
  0x17   : > { %183 = vst [vmem:[%s137_s30 + $0x10] sm:$0xff] %v182_v2 }
  0x18   : > { %185 = vst [vmem:[%s137_s30 + $0x18] sm:$0xff] %v184_v3 }
  0x19   : > { %187 = vst [vmem:[%s137_s30 + $0x20] sm:$0xff] %v186_v4 }
  0x1a   : > { %189 = vst [vmem:[%s137_s30 + $0x28] sm:$0xff] %v188_v5 }
  0x1b PF: > { %p424_p10 = scmp.ge.s32.totalorder %s554_s15, 1  ;;  %p194_p11 = scmp.lt.s32.totalorder %s554_s15, 3 }
  0x1d   : > { %p195_p12 = pnand %p424_p10, %p194_p11 }
  0x1e   : > { %s637_s4 = sand.u32 (!%p195_p12), 1, %s546_s13   ;;  %s435_s17 = sshll.u32 (!%p195_p12), %s419_s16, 2 }
  0x1f   : > { %198 = sbr.rel (%p195_p12) target bundleno = 229 (0xe5), region = 66  ;;  %s425_s11 = sshll.u32 (!%p195_p12), %s637_s4, 3 }
  0x20   : > { %s439_s5 = smul.u32 (!%p195_p12), 48, %s637_s4  ;;  %s348_s24 = scalar_lea.hbm (!%p195_p12), %s691_s3, %s435_s17 }
  0x21   : > { %s223_s25 = scalar_lea.vmem (!%p195_p12), [#allocation3], %s425_s11  ;;  %s656_s27 = sshll.u32 (!%p195_p12), %s348_s24, 4  ;;  %s352_s27 = int_to_ptr.hbm [resolvable:$true] %s656_s27 }
  0x22   : > { %s203_s8 = scalar_lea.vmem (!%p195_p12), [#allocation2], %s439_s5  ;;  %s349_s26 = sshll.u32 (!%p195_p12), %s223_s25, 4  ;;  %s350_s26 = int_to_ptr.vmem [resolvable:$true] %s349_s26 }
  0x23   : > { %s338_s16 = scalar_lea.sflag (!%p195_p12), [#allocation4], %s637_s4  ;;  %s506_s28 = sshra.s32 (!%p195_p12), %s352_s27, 4  ;;  %s507_s28 = int_to_ptr.hbm [resolvable:$true] %s506_s28 }
  0x24   : > { %v556_v6 = vmov 0   ;;  %v225_v7 = vld [vmem:[%s690_s2] sm:$0xf]  ;;  %vm238_vm0 = vcmask 1044480   ;;  %v430_v9 = vld [vmem:[%s203_s8 + $0x28] sm:$0x1f]  ;;  %p513_p2 = scmp.lt.s32.totalorder %s507_s28, %s691_s3 }
  0x25   : > { %483 = vset.pattern.permute.xlu0 %v556_v6  ;;  %v228_v8 = vld [vmem:[%s203_s8 + $0x10] sm:$0x1f]  ;;  %v227_v10 = vld [vmem:[%s203_s8 + $0x8] sm:$0xff]  ;;  %431 = vmatpush.msk.msra.mxu1 %vm238_vm0, %v430_v9  ;;  %v429_v11 = vld [vmem:[%s203_s8 + $0x20] sm:$0xff]  ;;  %vm234_vm1 = vcmask 171008   ;;  %vm262_vm2 = vcmask 1043456  }
  0x26   : > { %231 = vperm.xlu0 %483, %v225_v7   ;;  %426 = vmatpush.msk.msra.mxu0 %vm238_vm0, %v228_v8  ;;  %v226_v12 = vld [vmem:[%s203_s8] sm:$0xff]  ;;  %v428_v13 = vld [vmem:[%s203_s8 + $0x18] sm:$0xff]  ;;  %s508_s29 = scalar_lea.hbm %s507_s28, 8  ;;  %s512_s6 = scalar_lea.hbm %s691_s3, 16 }
  0x27   : > { %307 = vmatpush.msra.mxu1 %v429_v11  ;;  %v224_v14 = vld [vmem:[%s689_s1] sm:$0xf]  ;;  %p509_p13 = scmp.ne.s32.totalorder %s507_s28, %s508_s29  ;;  %p514_p3 = scmp.lt.s32.totalorder %s512_s6, %s508_s29 }
  0x28   : > { %256 = vmatpush.msra.mxu0 %v227_v10 }
  0x29   : > { %308 = vmatpush.msra.mxu1 %v428_v13  ;;  %p510_p0 = pnand %p509_p13, %p618_p6  ;;  %p515_p4 = por %p514_p3, %p513_p2 }
  0x2a   : > { %257 = vmatpush.msra.mxu0 %v226_v12  ;;  %432 = vmatmul.msk.f32.vlgmr.msra.gmra.mxu1 %vm234_vm1, %v224_v14 }
  0x2b   : > { %427 = vmatmul.msk.f32.vlgmr.msra.gmra.mxu0 %vm234_vm1, %v224_v14  ;;  %p511_p1 = pneg %p510_p0 }
  0x2d   : > { %p516_p5 = pnand %p515_p4, %p511_p1 }
  0x98   : > { %v232_v15 = vpop.permute.xlu0 %231 }
  0xa7   : > { %v310_v17 = vpop.f32.mrf.mxu1 }
  0xa8   : > { %v259_v16 = vpop.f32.mrf.mxu0  ;;  %v311_v19 = vadd.f32 %v310_v17, %v232_v15 }
  0xa9   : > { %v260_v18 = vadd.f32 %v259_v16, %v232_v15 }
  0xaa   : > { %v313_v21 = vsel %vm262_vm2, %v311_v19, -inf }
  0xab   : > { %v263_v20 = vsel %vm262_vm2, %v260_v18, -inf  ;;  %v314_v23 = vrot.slane %v313_v21, 4 }
  0xac   : > { %v264_v22 = vrot.slane %v263_v20, 4 }
  0xad   : > { %v315_v25 = vmax.f32 %v313_v21, %v314_v23 }
  0xae   : > { %v265_v24 = vmax.f32 %v263_v20, %v264_v22 }
  0xaf   : > { %v316_v27 = vrot.slane %v315_v25, 2 }
  0xb0   : > { %v266_v26 = vrot.slane %v265_v24, 2 }
  0xb1   : > { %v317_v29 = vmax.f32 %v315_v25, %v316_v27 }
  0xb2   : > { %v267_v28 = vmax.f32 %v265_v24, %v266_v26 }
  0xb3   : > { %v318_v31 = vrot.slane %v317_v29, 1 }
  0xb4   : > { %v268_v30 = vrot.slane %v267_v28, 1 }
  0xb5   : > { %v319_v33 = vmax.f32 %v317_v29, %v318_v31 }
  0xb6   : > { %v269_v32 = vmax.f32 %v267_v28, %v268_v30 }
  0xb7   : > { %v320_v35 = vsub.f32 %v311_v19, %v319_v33 }
  0xb8   : > { %v270_v34 = vsub.f32 %v260_v18, %v269_v32 }
  0xb9   : > { %v321_v37 = vmul.f32 1.442695, %v320_v35 }
  0xba   : > { %v271_v36 = vmul.f32 1.442695, %v270_v34 }
  0xbc   : > { %484 = vpow2.f32 %v271_v36 }
  0xbd   : > { %486 = vpow2.f32 %v321_v37 }
  0xc2   : > { %v485_v38 = vpop.eup %484 }
  0xc3   : > { %v487_v39 = vpop.eup %486  ;;  %v273_v40 = vsel %vm262_vm2, %v485_v38, 0.0 }
  0xc4   : > { %v274_v41 = vrot.slane %v273_v40, 4  ;;  %v323_v42 = vsel %vm262_vm2, %v487_v39, 0.0 }
  0xc5   : > { %v324_v43 = vrot.slane %v323_v42, 4 }
  0xc6   : > { %v275_v44 = vadd.f32 %v274_v41, %v273_v40 }
  0xc7   : > { %v325_v45 = vadd.f32 %v324_v43, %v323_v42 }
  0xc8   : > { %v276_v46 = vrot.slane %v275_v44, 2 }
  0xc9   : > { %v326_v47 = vrot.slane %v325_v45, 2 }
  0xca   : > { %v277_v48 = vadd.f32 %v276_v46, %v275_v44 }
  0xcb   : > { %v327_v49 = vadd.f32 %v326_v47, %v325_v45 }
  0xcc   : > { %v278_v50 = vrot.slane %v277_v48, 1 }
  0xcd   : > { %v328_v51 = vrot.slane %v327_v49, 1 }
  0xce   : > { %v279_v52 = vadd.f32 %v278_v50, %v277_v48 }
  0xcf   : > { %v329_v53 = vadd.f32 %v328_v51, %v327_v49 }
  0xd0   : > { %488 = vrcp.f32 %v279_v52 }
  0xd1   : > { %490 = vrcp.f32 %v329_v53 }
  0xd6   : > { %v489_v54 = vpop.eup %488 }
  0xd7   : > { %v491_v55 = vpop.eup %490  ;;  %v281_v56 = vmul.f32 %v489_v54, %v279_v52 }
  0xd8   : > { %v331_v57 = vmul.f32 %v491_v55, %v329_v53 }
  0xd9   : > { %v282_v58 = vsub.f32 2.0, %v281_v56 }
  0xda   : > { %v332_v59 = vsub.f32 2.0, %v331_v57 }
  0xdb   : > { %v283_v60 = vmul.f32 %v489_v54, %v282_v58 }
  0xdc   : > { %v333_v61 = vmul.f32 %v491_v55, %v332_v59 }
  0xdd   : > { %v284_v62 = vmul.f32 %v485_v38, %v283_v60 }
  0xde   : > { %v334_v63 = vmul.f32 %v487_v39, %v333_v61 }
  0xdf   : > { %285 = vst [vmem:[%s223_s25] sm:$0xf] %v284_v62 }
  0xe0   : > { %433 = vst [vmem:[%s223_s25 + $0x4] sm:$0xf] %v334_v63 }
  0xe1   : > { %519 = shalt.err (!%p516_p5)
}
  0xe2   : > { %s557_s4 = smov 64   ;;  %s558_s9 = smov 128  }
  0xe3   : > { %s559_s10 = smov 4  }
  0xe4   : > { %440 = dma.vmem_to_hbm [thread:$0]  (%p618_p6), %s350_s26, 128, %s352_s27, %s338_s16, %s557_s4, %s558_s9, %s559_s10  }
  0xe5 PF: > { %s366_s11 = sand.u32 1, %s542_s12   ;;  %p443_p7 = pnand %p422_p9, %p622_p8 }
  0xe6   : > { %s367_s17 = scalar_lea.sflag [#allocation4], %s366_s11 }
  0xe7   : > { %p444_p10 = pneg %p443_p7 }
  0xe9   : > { %537 = dma.done.wait (%p444_p10), %s367_s17, 128  }
  0xea   : > { %539 = vsyncadd (%p444_p10), %s367_s17, 4294967168  ;;  %p13_p11 = scmp.ge.s32.totalorder %s603_s18, 4   ;;  %s694_s12 = smov %s546_s13 }
  0xeb   : > { %s695_s13 = smov %s550_s14  ;;  %s696_s14 = smov %s616_s21 }
  0xec   : > { %s697_s15 = smov %s603_s18  ;;  %15 = sbr.rel (!%p13_p11) target bundleno = 3 (0x3), region = 112 }
  0xf1   :  { %373 = vsyncpa [#allocation4], 1 }
  0xf2   :  { %375 = vsyncpa [#allocation4 + $0x1], 1 }

</bundles_post_ra>
